<compile_context>
chip_gen: v7x
topology: tpu7x:2x2x1
jax: 0.10.0
libtpu: 0.0.40
codegen_flags: <defaults>
</compile_context>

<pallas_src>
import jax
import jax.numpy as jnp
from jax import lax
from jax.experimental import pallas as pl
from jax.experimental.pallas import tpu as pltpu


def _stcn_kernel(x_ref, we_ref, shift_ref, ws_ref, bs_ref, o_ref):
    # x_ref:     (tm, C_in)  input rows (flattened B*T*K), channels-last
    # we_ref:    (C_in, CH)  expand 1x1 weight with BN scale pre-folded in
    # shift_ref: (1, CH)     folded shift = (b_expand - mean)*scale + beta (f32)
    # ws_ref:    (3, CH)     shrink 1x1 weight (out-major, f32)
    # bs_ref:    (3, 1)      shrink bias (f32)
    # o_ref:     (3, tm)     transposed output tile (lane dim = tm -> dense vst)
    h = jnp.dot(x_ref[...], we_ref[...],
                preferred_element_type=jnp.float32)          # (tm, CH) f32 acc
    h = jnp.maximum(h + shift_ref[...], 0.0)                 # folded bias+BN, ReLU
    # Dropout: eval mode -> identity.
    # Shrink oriented as ws . h^T so the result's lane dimension is tm
    # (lane-dense output block -> unmasked stores, contiguous writeback DMA).
    y_t = lax.dot_general(ws_ref[...], h,
                          dimension_numbers=(((1,), (1,)), ((), ())),
                          preferred_element_type=jnp.float32)  # (3, tm)
    o_ref[...] = (y_t + bs_ref[...]).astype(o_ref.dtype)


def stcn_forward(x, params, *, tm=1024, compute_dtype=jnp.bfloat16,
                 out_dtype=jnp.float32):
    """x: (B, T, K, C_in) -> (B, T, K, 3).

    tm: row tile (rounded to a multiple of 128; clamped to the padded row
    count).  For real (large-M) shapes keep tm in the 512-2048 range so the
    grid has >=2 steps (v7x megacore) while amortizing per-step overhead.
    """
    B, T, K, C_in = x.shape
    CH = params["w_expand"].shape[0]          # channels
    M = B * T * K

    # --- offline folding: expand bias + eval-mode BatchNorm2d -------------
    eps = 1e-5
    scale = params["bn_gamma"] / jnp.sqrt(params["bn_var"] + eps)      # (CH,)
    we_scaled = (params["w_expand"].T * scale[None, :]).astype(compute_dtype)
    shift = ((params["b_expand"] - params["bn_mean"]) * scale
             + params["bn_beta"]).reshape(1, CH).astype(jnp.float32)
    ws = params["w_shrink"].astype(jnp.float32)                        # (3, CH)
    bs = params["b_shrink"].reshape(3, 1).astype(jnp.float32)

    x_flat = x.reshape(M, C_in)
    if x_flat.dtype != compute_dtype:
        # Ideally the caller hands compute_dtype data directly (or XLA fuses
        # this cast upstream); done here it is one extra pass over x.
        x_flat = x_flat.astype(compute_dtype)

    # Row tile: multiple of 128 (so the (3, tm) output block is lane-dense),
    # clamped so a single tile never exceeds the lane-padded row count.
    tm = max(128, (tm // 128) * 128)
    tm = min(tm, pl.cdiv(M, 128) * 128)
    grid_m = pl.cdiv(M, tm)        # ragged tail handled by Pallas block masking

    out_t = pl.pallas_call(
        _stcn_kernel,
        out_shape=jax.ShapeDtypeStruct((3, M), out_dtype),
        grid_spec=pltpu.PrefetchScalarGridSpec(
            num_scalar_prefetch=0,
            grid=(grid_m,),
            in_specs=[
                pl.BlockSpec((tm, C_in), lambda i: (i, 0)),
                pl.BlockSpec((C_in, CH), lambda i: (0, 0)),
                pl.BlockSpec((1, CH), lambda i: (0, 0)),
                pl.BlockSpec((3, CH), lambda i: (0, 0)),
                pl.BlockSpec((3, 1), lambda i: (0, 0)),
            ],
            out_specs=pl.BlockSpec((3, tm), lambda i: (0, i)),
        ),
        compiler_params=pltpu.CompilerParams(
            dimension_semantics=("parallel",)),
    )(x_flat, we_scaled, shift, ws, bs)

    # (3, M) -> (B, T, K, 3): equivalent to the module's final permute(0,2,3,1).
    return out_t.T.reshape(B, T, K, 3)


def _reference(x, params):
    """Pure-JAX replica of the PyTorch forward (eval mode), f32 throughout."""
    eps = 1e-5
    h = jnp.einsum("btkc,oc->btko", x, params["w_expand"]) + params["b_expand"]
    scale = params["bn_gamma"] / jnp.sqrt(params["bn_var"] + eps)
    h = (h - params["bn_mean"]) * scale + params["bn_beta"]
    h = jnp.maximum(h, 0.0)
    y = jnp.einsum("btko,po->btkp", h, params["w_shrink"]) + params["b_shrink"]
    return y


if __name__ == "__main__":
    # Small shapes consistent with the module's forward asserts:
    #   x: (B, T, K, C) with K == num_joints_in, C == in_features
    B, T = 2, 8
    num_joints_in = 16
    in_features = 4
    channels = 32

    key = jax.random.PRNGKey(0)
    kx, kwe, kbe, kws, kg, kb, km, kv, kx2 = jax.random.split(key, 9)

    x = jax.random.normal(kx, (B, T, num_joints_in, in_features), jnp.float32)

    params = {
        # synthetic expand 1x1 conv (stand-in for abstract _forward_blocks)
        "w_expand": 0.1 * jax.random.normal(kwe, (channels, in_features), jnp.float32),
        "b_expand": 0.1 * jax.random.normal(kbe, (channels,), jnp.float32),
        # expand_bn = nn.BatchNorm2d(channels) (eval-mode running stats)
        "bn_gamma": 1.0 + 0.05 * jax.random.normal(kg, (channels,), jnp.float32),
        "bn_beta": 0.05 * jax.random.normal(kb, (channels,), jnp.float32),
        "bn_mean": 0.05 * jax.random.normal(km, (channels,), jnp.float32),
        "bn_var": jnp.abs(0.1 * jax.random.normal(kv, (channels,), jnp.float32)) + 1.0,
        # shrink = nn.Conv2d(channels, 3, 1); bias constant-initialized to 0
        "w_shrink": 0.1 * jax.random.normal(kws, (3, channels), jnp.float32),
        "b_shrink": jnp.zeros((3,), jnp.float32),
    }

    ref = _reference(x, params)

    # (1) f32 path: tight check of the folding algebra + transposed output.
    out_f32 = jax.block_until_ready(
        stcn_forward(x, params, compute_dtype=jnp.float32))
    assert out_f32.shape == (B, T, num_joints_in, 3), out_f32.shape
    assert jnp.allclose(out_f32, ref, atol=1e-4, rtol=1e-4), \
        float(jnp.max(jnp.abs(out_f32 - ref)))

    # (2) bf16 input stream (default): halves the dominant HBM read; f32
    #     accumulation and epilogue, so only input/weight quantization error.
    out_bf16 = jax.block_until_ready(
        stcn_forward(x, params, compute_dtype=jnp.bfloat16))
    assert jnp.allclose(out_bf16, ref, atol=5e-2, rtol=5e-2), \
        float(jnp.max(jnp.abs(out_bf16 - ref)))

    # (3) ragged row count (M = 2*7*16 = 224, not a multiple of tm=128):
    #     exercises the pl.cdiv grid + masked tail block (no padding/assert).
    x2 = jax.random.normal(kx2, (2, 7, num_joints_in, in_features), jnp.float32)
    out2 = jax.block_until_ready(
        stcn_forward(x2, params, tm=128, compute_dtype=jnp.float32))
    ref2 = _reference(x2, params)
    assert out2.shape == (2, 7, num_joints_in, 3), out2.shape
    assert jnp.allclose(out2, ref2, atol=1e-4, rtol=1e-4), \
        float(jnp.max(jnp.abs(out2 - ref2)))

    print("KERNEL_OK")
</pallas_src>

<mosaic_0001>
module attributes {stable_mosaic.version = 11 : i64} {
  func.func @_stcn_kernel(%arg0: i32, %arg1: memref<256x4xf32, #tpu.memory_space<vmem>>, %arg2: memref<4x32xf32, #tpu.memory_space<vmem>>, %arg3: memref<1x32xf32, #tpu.memory_space<vmem>>, %arg4: memref<3x32xf32, #tpu.memory_space<vmem>>, %arg5: memref<3x1xf32, #tpu.memory_space<vmem>>, %arg6: memref<3x256xf32, #tpu.memory_space<vmem>>) attributes {dimension_semantics = [#tpu.dimension_semantics<parallel>], iteration_bounds = array<i64: 1>, scalar_prefetch = 0 : i64, scratch_operands = 0 : i64, tpu.core_type = #tpu.core_type<tc>, window_params = [{transform_indices = @transform_0, window_bounds = array<i64: 256, 4>}, {pipeline_mode = #tpu.pipeline_mode<synchronous>, transform_indices = @transform_1, window_bounds = array<i64: 4, 32>}, {pipeline_mode = #tpu.pipeline_mode<synchronous>, transform_indices = @transform_2, window_bounds = array<i64: 1, 32>}, {pipeline_mode = #tpu.pipeline_mode<synchronous>, transform_indices = @transform_3, window_bounds = array<i64: 3, 32>}, {pipeline_mode = #tpu.pipeline_mode<synchronous>, transform_indices = @transform_4, window_bounds = array<i64: 3, 1>}, {transform_indices = @transform_5, window_bounds = array<i64: 3, 256>}]} {
    %c0 = arith.constant 0 : index
    %c0_0 = arith.constant 0 : index
    %0 = vector.load %arg1[%c0, %c0_0] : memref<256x4xf32, #tpu.memory_space<vmem>>, vector<256x4xf32>
    %c0_1 = arith.constant 0 : index
    %c0_2 = arith.constant 0 : index
    %1 = vector.load %arg2[%c0_1, %c0_2] : memref<4x32xf32, #tpu.memory_space<vmem>>, vector<4x32xf32>
    %cst = arith.constant dense<0.000000e+00> : vector<256x32xf32>
    %2 = tpu.matmul %0, %1, %cst {dimension_numbers = #tpu.dot_dimension_numbers<[1], [0], [0], [1], [0, 0, 1, 1], [], []>} : vector<256x4xf32>, vector<4x32xf32>, vector<256x32xf32> -> vector<256x32xf32>
    %c0_3 = arith.constant 0 : index
    %c0_4 = arith.constant 0 : index
    %3 = vector.load %arg3[%c0_3, %c0_4] : memref<1x32xf32, #tpu.memory_space<vmem>>, vector<1x32xf32>
    %4 = vector.broadcast %3 : vector<1x32xf32> to vector<256x32xf32>
    %5 = arith.addf %2, %4 : vector<256x32xf32>
    %cst_5 = arith.constant 0.000000e+00 : f32
    %6 = vector.broadcast %cst_5 : f32 to vector<256x32xf32>
    %7 = arith.maximumf %5, %6 : vector<256x32xf32>
    %c0_6 = arith.constant 0 : index
    %c0_7 = arith.constant 0 : index
    %8 = vector.load %arg4[%c0_6, %c0_7] : memref<3x32xf32, #tpu.memory_space<vmem>>, vector<3x32xf32>
    %cst_8 = arith.constant dense<0.000000e+00> : vector<3x256xf32>
    %9 = tpu.matmul %8, %7, %cst_8 {dimension_numbers = #tpu.dot_dimension_numbers<[1], [1], [0], [0], [0, 0, 1, 0], [], []>} : vector<3x32xf32>, vector<256x32xf32>, vector<3x256xf32> -> vector<3x256xf32>
    %c0_9 = arith.constant 0 : index
    %c0_10 = arith.constant 0 : index
    %10 = vector.load %arg5[%c0_9, %c0_10] : memref<3x1xf32, #tpu.memory_space<vmem>>, vector<3x1xf32>
    %11 = vector.broadcast %10 : vector<3x1xf32> to vector<3x256xf32>
    %12 = arith.addf %9, %11 : vector<3x256xf32>
    %c0_11 = arith.constant 0 : index
    %c0_12 = arith.constant 0 : index
    %13 = vector.load %arg6[%c0_11, %c0_12] : memref<3x256xf32, #tpu.memory_space<vmem>>, vector<3x256xf32>
    tpu.vector_store %arg6[%c0_11, %c0_12], %12 {strides = array<i32>} : memref<3x256xf32, #tpu.memory_space<vmem>>, vector<3x256xf32>,
    return
  }
  func.func @transform_0(%arg0: i32) -> (i32, i32) {
    %c0_i32 = arith.constant 0 : i32
    %c0_i32_0 = arith.constant 0 : i32
    return %arg0, %c0_i32 : i32, i32
  }
  func.func @transform_1(%arg0: i32) -> (i32, i32) {
    %c0_i32 = arith.constant 0 : i32
    %c0_i32_0 = arith.constant 0 : i32
    %c0_i32_1 = arith.constant 0 : i32
    return %c0_i32, %c0_i32_0 : i32, i32
  }
  func.func @transform_2(%arg0: i32) -> (i32, i32) {
    %c0_i32 = arith.constant 0 : i32
    %c0_i32_0 = arith.constant 0 : i32
    %c0_i32_1 = arith.constant 0 : i32
    return %c0_i32, %c0_i32_0 : i32, i32
  }
  func.func @transform_3(%arg0: i32) -> (i32, i32) {
    %c0_i32 = arith.constant 0 : i32
    %c0_i32_0 = arith.constant 0 : i32
    %c0_i32_1 = arith.constant 0 : i32
    return %c0_i32, %c0_i32_0 : i32, i32
  }
  func.func @transform_4(%arg0: i32) -> (i32, i32) {
    %c0_i32 = arith.constant 0 : i32
    %c0_i32_0 = arith.constant 0 : i32
    %c0_i32_1 = arith.constant 0 : i32
    return %c0_i32, %c0_i32_0 : i32, i32
  }
  func.func @transform_5(%arg0: i32) -> (i32, i32) {
    %c0_i32 = arith.constant 0 : i32
    %c0_i32_0 = arith.constant 0 : i32
    return %c0_i32, %arg0 : i32, i32
  }
}

</mosaic_0001>

<bundles_post_ra>
// kernel: tpu_custom_call.1
= control target key start
LH: loop header
LB: loop body
LE: loop exit
PB: predicated region body
PF: predicated region fallthrough
CT: control target
= control target key end

     0   :  { %vm158_vm0 = vcmask 1043456   ;;  %vm61_vm1 = vcmask 31744   ;;  %s1161_s0 = inlined_call_operand.vmem [shape: f32[256,4], index: 0, kind: input, shape index: {}]   ;;  %s1162_s1 = inlined_call_operand.vmem [shape: f32[4,32], index: 1, kind: input, shape index: {}]   ;;  %s1163_s2 = inlined_call_operand.vmem [shape: f32[1,32], index: 2, kind: input, shape index: {}]   ;;  %s1164_s3 = inlined_call_operand.vmem [shape: f32[3,32], index: 3, kind: input, shape index: {}]   ;;  %s1165_s4 = inlined_call_operand.vmem [shape: f32[3,1], index: 4, kind: input, shape index: {}]   ;;  %s1166_s5 = inlined_call_operand.hbm [shape: f32[3,256], index: 5, kind: output, shape index: {}]  }
   0x1   :  { %v53_v0 = vld [vmem:[%s1162_s1] sm:$0xf]  ;;  %v22_v2 = vld [vmem:[%s1161_s0 + $0x8] sm:$0xff]  ;;  %v23_v3 = vld [vmem:[%s1161_s0 + $0x10] sm:$0xff] }
   0x2   :  { %v21_v1 = vld [vmem:[%s1161_s0] sm:$0xff]  ;;  %750 = vmatprep.subr.msk.mxu0 %vm158_vm0, %v53_v0  ;;  %v24_v4 = vld [vmem:[%s1161_s0 + $0x18] sm:$0xff]  ;;  %v26_v6 = vld [vmem:[%s1161_s0 + $0x28] sm:$0xff] }
   0x3   :  { %752 = vmatprep.mubr.msk.f32.mxu0 %vm61_vm1, %v21_v1  ;;  %751 = vmatpush3.msk.msra.mxu0 %vm158_vm0, %v53_v0  ;;  %v25_v5 = vld [vmem:[%s1161_s0 + $0x20] sm:$0xff]  ;;  %v27_v7 = vld [vmem:[%s1161_s0 + $0x30] sm:$0xff] }
   0x4   :  { %753 = vmatmul.mubr.msk.f32.vlgmr.msra.gmra.mrb[0].mxu0 %vm61_vm1, %v22_v2 }
   0x5   :  { %755 = vmatprep.mubr.msk.f32.mxu0 %vm61_vm1, %v23_v3 }
   0x8   :  { %756 = vmatmul.mubr.msk.f32.gmra.mrb[2].mxu0 %vm61_vm1, %v24_v4 }
   0x9   :  { %758 = vmatprep.mubr.msk.f32.mxu0 %vm61_vm1, %v25_v5 }
   0xc   :  { %759 = vmatmul.mubr.msk.f32.gmra.mrb[4].mxu0 %vm61_vm1, %v26_v6 }
   0xd   :  { %10 = vsyncpa [#allocation3], 0  ;;  %761 = vmatprep.mubr.msk.f32.mxu0 %vm61_vm1, %v27_v7  ;;  %v28_v8 = vld [vmem:[%s1161_s0 + $0x38] sm:$0xff]  ;;  %v29_v9 = vld [vmem:[%s1161_s0 + $0x40] sm:$0xff]  ;;  %vm426_vm2 = vcmask 261120   ;;  %v875_v35 = vmov 0  }
   0xe   :  { %v30_v10 = vld [vmem:[%s1161_s0 + $0x48] sm:$0xff]  ;;  %v31_v11 = vld [vmem:[%s1161_s0 + $0x50] sm:$0xff]  ;;  %v32_v12 = vld [vmem:[%s1161_s0 + $0x58] sm:$0xff]  ;;  %850 = vset.pattern.permute.xlu0 %v875_v35 }
   0xf   :  { %v33_v13 = vld [vmem:[%s1161_s0 + $0x60] sm:$0xff]  ;;  %v34_v14 = vld [vmem:[%s1161_s0 + $0x68] sm:$0xff]  ;;  %v35_v15 = vld [vmem:[%s1161_s0 + $0x70] sm:$0xff] }
  0x10   :  { %762 = vmatmul.mubr.msk.f32.gmra.mrb[6].mxu0 %vm61_vm1, %v28_v8  ;;  %v36_v16 = vld [vmem:[%s1161_s0 + $0x78] sm:$0xff]  ;;  %v37_v17 = vld [vmem:[%s1161_s0 + $0x80] sm:$0xff]  ;;  %v38_v18 = vld [vmem:[%s1161_s0 + $0x88] sm:$0xff] }
  0x11   :  { %764 = vmatprep.mubr.msk.f32.mxu0 %vm61_vm1, %v29_v9  ;;  %v39_v19 = vld [vmem:[%s1161_s0 + $0x90] sm:$0xff]  ;;  %v40_v20 = vld [vmem:[%s1161_s0 + $0x98] sm:$0xff]  ;;  %v41_v21 = vld [vmem:[%s1161_s0 + $0xa0] sm:$0xff] }
  0x12   :  { %v42_v22 = vld [vmem:[%s1161_s0 + $0xa8] sm:$0xff]  ;;  %v43_v23 = vld [vmem:[%s1161_s0 + $0xb0] sm:$0xff]  ;;  %v44_v24 = vld [vmem:[%s1161_s0 + $0xb8] sm:$0xff] }
  0x13   :  { %v45_v25 = vld [vmem:[%s1161_s0 + $0xc0] sm:$0xff]  ;;  %v46_v26 = vld [vmem:[%s1161_s0 + $0xc8] sm:$0xff]  ;;  %v47_v27 = vld [vmem:[%s1161_s0 + $0xd0] sm:$0xff] }
  0x14   :  { %765 = vmatmul.mubr.msk.f32.gmra.mrb[8].mxu0 %vm61_vm1, %v30_v10  ;;  %v48_v28 = vld [vmem:[%s1161_s0 + $0xd8] sm:$0xff]  ;;  %v49_v29 = vld [vmem:[%s1161_s0 + $0xe0] sm:$0xff]  ;;  %v50_v30 = vld [vmem:[%s1161_s0 + $0xe8] sm:$0xff] }
  0x15   :  { %767 = vmatprep.mubr.msk.f32.mxu0 %vm61_vm1, %v31_v11  ;;  %v51_v31 = vld [vmem:[%s1161_s0 + $0xf0] sm:$0xff]  ;;  %v52_v32 = vld [vmem:[%s1161_s0 + $0xf8] sm:$0xff]  ;;  %v1041_v33 = vld [vmem:[%s1164_s3] sm:$0x7] }
  0x16   :  { %748 = vmatprep.mubr.msk.f32.mxu1 %vm426_vm2, %v1041_v33  ;;  %v420_v34 = vld [vmem:[%s1165_s4] sm:$0x7]  ;;  %vm1090_vm3 = vmpackc.low %vm426_vm2, %vm426_vm2 }
  0x17   :  { %423 = vperm.xlu0 %850, %v420_v34   ;;  %v1051_v36 = vld [vmem:[%s1163_s2] ss:$0 sm:$0xff]  ;;  %s876_s2 = smov [#allocation2]  }
  0x18   :  { %768 = vmatmul.mubr.msk.f32.gmra.mrb[10].mxu0 %vm61_vm1, %v32_v12  ;;  %s608_s3 = sshll.u32 %s876_s2, 4  ;;  %s609_s3 = int_to_ptr.vmem [resolvable:$true] %s608_s3 }
  0x19   :  { %770 = vmatprep.mubr.msk.f32.mxu0 %vm61_vm1, %v33_v13  ;;  %s851_s4 = scalar_lea.vmem %s609_s3, 128  ;;  %p856_p1 = scmp.lt.s32.totalorder %s609_s3, %s609_s3 }
  0x1a   :  { %p852_p0 = scmp.ne.s32.totalorder %s609_s3, %s851_s4  ;;  %p857_p2 = scmp.lt.s32.totalorder %s851_s4, %s851_s4 }
  0x1c   :  { %771 = vmatmul.mubr.msk.f32.gmra.mrb[12].mxu0 %vm61_vm1, %v34_v14  ;;  %p858_p3 = por %p857_p2, %p856_p1 }
  0x1d   :  { %773 = vmatprep.mubr.msk.f32.mxu0 %vm61_vm1, %v35_v15 }
  0x1e   :  { %p859_p4 = pnand %p858_p3, %p852_p0 }
  0x20   :  { %774 = vmatmul.mubr.msk.f32.gmra.mrb[14].mxu0 %vm61_vm1, %v36_v16 }
  0x21   :  { %776 = vmatprep.mubr.msk.f32.mxu0 %vm61_vm1, %v37_v17 }
  0x24   :  { %777 = vmatmul.mubr.msk.f32.gmra.mrb[16].mxu0 %vm61_vm1, %v38_v18 }
  0x25   :  { %779 = vmatprep.mubr.msk.f32.mxu0 %vm61_vm1, %v39_v19 }
  0x28   :  { %780 = vmatmul.mubr.msk.f32.gmra.mrb[18].mxu0 %vm61_vm1, %v40_v20 }
  0x29   :  { %782 = vmatprep.mubr.msk.f32.mxu0 %vm61_vm1, %v41_v21 }
  0x2c   :  { %783 = vmatmul.mubr.msk.f32.gmra.mrb[20].mxu0 %vm61_vm1, %v42_v22 }
  0x2d   :  { %785 = vmatprep.mubr.msk.f32.mxu0 %vm61_vm1, %v43_v23 }
  0x30   :  { %786 = vmatmul.mubr.msk.f32.gmra.mrb[22].mxu0 %vm61_vm1, %v44_v24 }
  0x31   :  { %788 = vmatprep.mubr.msk.f32.mxu0 %vm61_vm1, %v45_v25 }
  0x34   :  { %789 = vmatmul.mubr.msk.f32.gmra.mrb[24].mxu0 %vm61_vm1, %v46_v26 }
  0x35   :  { %791 = vmatprep.mubr.msk.f32.mxu0 %vm61_vm1, %v47_v27 }
  0x38   :  { %792 = vmatmul.mubr.msk.f32.gmra.mrb[26].mxu0 %vm61_vm1, %v48_v28 }
  0x39   :  { %794 = vmatprep.mubr.msk.f32.mxu0 %vm61_vm1, %v49_v29 }
  0x3c   :  { %795 = vmatmul.mubr.msk.f32.gmra.mrb[28].mxu0 %vm61_vm1, %v50_v30 }
  0x3d   :  { %797 = vmatprep.mubr.msk.f32.mxu0 %vm61_vm1, %v51_v31 }
  0x40   :  { %798 = vmatmul.mubr.msk.f32.gmra.mrb[30].mxu0 %vm61_vm1, %v52_v32 }
  0xd7   :  { %v754_v37 = vpop.f32.mrb[0].mxu0 }
  0xd8   :  { %v234_v38 = vadd.f32 %v754_v37, %v1051_v36  ;;  %v228_v39 = vpop.f32.mrb[1].mxu0 }
  0xd9   :  { %v229_v40 = vadd.f32 %v1051_v36, %v228_v39 }
  0xda   :  { %v388_v41 = vmax.f32 %v234_v38, 0.0 }
  0xdb   :  { %v387_v42 = vmax.f32 %v229_v40, 0.0  ;;  %v757_v43 = vpop.f32.mrb[2].mxu0 }
  0xdc   :  { %v244_v44 = vadd.f32 %v757_v43, %v1051_v36  ;;  %v238_v45 = vpop.f32.mrb[3].mxu0 }
  0xdd   :  { %v1056_v46 = vpack.c.bf16 %v388_v41, %v387_v42  ;;  %v239_v47 = vadd.f32 %v1051_v36, %v238_v45 }
  0xde   :  { %v390_v48 = vmax.f32 %v244_v44, 0.0 }
  0xdf   :  { %v389_v49 = vmax.f32 %v239_v47, 0.0  ;;  %v760_v50 = vpop.f32.mrb[4].mxu0 }
  0xe0   :  { %v254_v51 = vadd.f32 %v760_v50, %v1051_v36  ;;  %v248_v52 = vpop.f32.mrb[5].mxu0 }
  0xe1   :  { %v1060_v53 = vpack.c.bf16 %v390_v48, %v389_v49  ;;  %v249_v54 = vadd.f32 %v1051_v36, %v248_v52 }
  0xe2   :  { %v392_v55 = vmax.f32 %v254_v51, 0.0 }
  0xe3   :  { %v391_v56 = vmax.f32 %v249_v54, 0.0  ;;  %v763_v57 = vpop.f32.mrb[6].mxu0 }
  0xe4   :  { %v264_v58 = vadd.f32 %v763_v57, %v1051_v36  ;;  %v258_v59 = vpop.f32.mrb[7].mxu0 }
  0xe5   :  { %v1064_v60 = vpack.c.bf16 %v392_v55, %v391_v56  ;;  %v259_v61 = vadd.f32 %v1051_v36, %v258_v59 }
  0xe6   :  { %v394_v62 = vmax.f32 %v264_v58, 0.0 }
  0xe7   :  { %v393_v63 = vmax.f32 %v259_v61, 0.0  ;;  %v766_v0 = vpop.f32.mrb[8].mxu0 }
  0xe8   :  { %v274_v1 = vadd.f32 %v766_v0, %v1051_v36  ;;  %v268_v2 = vpop.f32.mrb[9].mxu0 }
  0xe9   :  { %v1068_v3 = vpack.c.bf16 %v394_v62, %v393_v63  ;;  %v269_v4 = vadd.f32 %v1051_v36, %v268_v2 }
  0xea   :  { %v396_v5 = vmax.f32 %v274_v1, 0.0 }
  0xeb   :  { %v395_v6 = vmax.f32 %v269_v4, 0.0  ;;  %v769_v7 = vpop.f32.mrb[10].mxu0 }
  0xec   :  { %v284_v8 = vadd.f32 %v769_v7, %v1051_v36  ;;  %v278_v9 = vpop.f32.mrb[11].mxu0 }
  0xed   :  { %v1072_v10 = vpack.c.bf16 %v396_v5, %v395_v6  ;;  %v279_v11 = vadd.f32 %v1051_v36, %v278_v9 }
  0xee   :  { %v398_v12 = vmax.f32 %v284_v8, 0.0 }
  0xef   :  { %v397_v13 = vmax.f32 %v279_v11, 0.0  ;;  %v772_v14 = vpop.f32.mrb[12].mxu0 }
  0xf0   :  { %v294_v15 = vadd.f32 %v772_v14, %v1051_v36  ;;  %v288_v16 = vpop.f32.mrb[13].mxu0 }
  0xf1   :  { %v1076_v17 = vpack.c.bf16 %v398_v12, %v397_v13  ;;  %v289_v18 = vadd.f32 %v1051_v36, %v288_v16 }
  0xf2   :  { %v400_v19 = vmax.f32 %v294_v15, 0.0 }
  0xf3   :  { %v399_v20 = vmax.f32 %v289_v18, 0.0  ;;  %v775_v21 = vpop.f32.mrb[14].mxu0 }
  0xf4   :  { %v304_v22 = vadd.f32 %v775_v21, %v1051_v36  ;;  %v298_v23 = vpop.f32.mrb[15].mxu0 }
  0xf5   :  { %v1080_v24 = vpack.c.bf16 %v400_v19, %v399_v20  ;;  %v299_v25 = vadd.f32 %v1051_v36, %v298_v23 }
  0xf6   :  { %v402_v26 = vmax.f32 %v304_v22, 0.0 }
  0xf7   :  { %v401_v27 = vmax.f32 %v299_v25, 0.0  ;;  %v778_v28 = vpop.f32.mrb[16].mxu0 }
  0xf8   :  { %v314_v29 = vadd.f32 %v778_v28, %v1051_v36  ;;  %v308_v30 = vpop.f32.mrb[17].mxu0 }
  0xf9   :  { %v1084_v31 = vpack.c.bf16 %v402_v26, %v401_v27  ;;  %v309_v32 = vadd.f32 %v1051_v36, %v308_v30 }
  0xfa   :  { %v404_v34 = vmax.f32 %v314_v29, 0.0 }
  0xfb   :  { %v403_v35 = vmax.f32 %v309_v32, 0.0  ;;  %v781_v37 = vpop.f32.mrb[18].mxu0 }
  0xfc   :  { %v324_v38 = vadd.f32 %v781_v37, %v1051_v36  ;;  %v318_v39 = vpop.f32.mrb[19].mxu0 }
  0xfd   :  { %v319_v41 = vadd.f32 %v1051_v36, %v318_v39  ;;  %v800_v42 = vpack.c.bf16 %v404_v34, %v403_v35 }
  0xfe   :  { %v406_v43 = vmax.f32 %v324_v38, 0.0 }
  0xff   :  { %v405_v44 = vmax.f32 %v319_v41, 0.0  ;;  %802 = vmatprep.subr.msk.bf16.mxu1 %vm1090_vm3, %v800_v42  ;;  %v784_v45 = vpop.f32.mrb[20].mxu0 }
 0x100   :  { %805 = vmatpush3.bf16.xpose.msk.msra.mxu1 %vm1090_vm3, %v1056_v46  ;;  %v334_v47 = vadd.f32 %v784_v45, %v1051_v36  ;;  %v328_v48 = vpop.f32.mrb[21].mxu0 }
 0x101   :  { %v806_v49 = vpack.c.bf16 %v406_v43, %v405_v44  ;;  %v329_v50 = vadd.f32 %v1051_v36, %v328_v48 }
 0x102   :  { %v408_v51 = vmax.f32 %v334_v47, 0.0 }
 0x103   :  { %808 = vmatprep.subr.msk.bf16.mxu1 %vm1090_vm3, %v806_v49  ;;  %v407_v52 = vmax.f32 %v329_v50, 0.0  ;;  %v787_v54 = vpop.f32.mrb[22].mxu0 }
 0x104   :  { %v344_v55 = vadd.f32 %v787_v54, %v1051_v36  ;;  %v338_v56 = vpop.f32.mrb[23].mxu0 }
 0x105   :  { %v812_v57 = vpack.c.bf16 %v408_v51, %v407_v52  ;;  %v339_v58 = vadd.f32 %v1051_v36, %v338_v56 }
 0x106   :  { %v410_v59 = vmax.f32 %v344_v55, 0.0 }
 0x107   :  { %v409_v46 = vmax.f32 %v339_v58, 0.0  ;;  %v790_v61 = vpop.f32.mrb[24].mxu0 }
 0x108   :  { %811 = vmatpush3.bf16.xpose.msk.msra.mxu1 %vm1090_vm3, %v1060_v53  ;;  %v354_v62 = vadd.f32 %v790_v61, %v1051_v36  ;;  %v348_v63 = vpop.f32.mrb[25].mxu0 }
 0x109   :  { %814 = vmatprep.subr.msk.bf16.mxu1 %vm1090_vm3, %v812_v57  ;;  %v818_v0 = vpack.c.bf16 %v410_v59, %v409_v46  ;;  %v349_v1 = vadd.f32 %v1051_v36, %v348_v63 }
 0x10a   :  { %v412_v2 = vmax.f32 %v354_v62, 0.0 }
 0x10b   :  { %v411_v4 = vmax.f32 %v349_v1, 0.0  ;;  %v793_v5 = vpop.f32.mrb[26].mxu0 }
 0x10c   :  { %v364_v6 = vadd.f32 %v793_v5, %v1051_v36  ;;  %v358_v7 = vpop.f32.mrb[27].mxu0 }
 0x10d   :  { %v824_v8 = vpack.c.bf16 %v412_v2, %v411_v4  ;;  %v359_v9 = vadd.f32 %v1051_v36, %v358_v7 }
 0x10e   :  { %v414_v11 = vmax.f32 %v364_v6, 0.0 }
 0x10f   :  { %v413_v53 = vmax.f32 %v359_v9, 0.0  ;;  %v796_v12 = vpop.f32.mrb[28].mxu0 }
 0x110   :  { %817 = vmatpush3.bf16.xpose.msk.msra.mxu1 %vm1090_vm3, %v1064_v60  ;;  %v374_v13 = vadd.f32 %v796_v12, %v1051_v36  ;;  %v368_v14 = vpop.f32.mrb[29].mxu0 }
 0x111   :  { %820 = vmatprep.subr.msk.bf16.mxu1 %vm1090_vm3, %v818_v0  ;;  %v830_v15 = vpack.c.bf16 %v414_v11, %v413_v53  ;;  %v369_v16 = vadd.f32 %v1051_v36, %v368_v14 }
 0x112   :  { %v416_v18 = vmax.f32 %v374_v13, 0.0 }
 0x113   :  { %v415_v19 = vmax.f32 %v369_v16, 0.0  ;;  %v799_v20 = vpop.f32.mrb[30].mxu0 }
 0x114   :  { %v384_v21 = vadd.f32 %v799_v20, %v1051_v36  ;;  %v378_v22 = vpop.f32.mrb[31].mxu0 }
 0x115   :  { %v836_v23 = vpack.c.bf16 %v416_v18, %v415_v19  ;;  %v379_v25 = vadd.f32 %v1051_v36, %v378_v22  ;;  %v424_v36 = vpop.permute.xlu0 %423 }
 0x116   :  { %v418_v26 = vmax.f32 %v384_v21, 0.0 }
 0x117   :  { %v417_v60 = vmax.f32 %v379_v25, 0.0 }
 0x118   :  { %823 = vmatpush3.bf16.xpose.msk.msra.mxu1 %vm1090_vm3, %v1068_v3 }
 0x119   :  { %826 = vmatprep.subr.msk.bf16.mxu1 %vm1090_vm3, %v824_v8  ;;  %v842_v27 = vpack.c.bf16 %v418_v26, %v417_v60 }
 0x120   :  { %829 = vmatpush3.bf16.xpose.msk.msra.mxu1 %vm1090_vm3, %v1072_v10 }
 0x121   :  { %832 = vmatprep.subr.msk.bf16.mxu1 %vm1090_vm3, %v830_v15 }
 0x128   :  { %835 = vmatpush3.bf16.xpose.msk.msra.mxu1 %vm1090_vm3, %v1076_v17 }
 0x129   :  { %838 = vmatprep.subr.msk.bf16.mxu1 %vm1090_vm3, %v836_v23 }
 0x130   :  { %841 = vmatpush3.bf16.xpose.msk.msra.mxu1 %vm1090_vm3, %v1080_v24 }
 0x131   :  { %844 = vmatprep.subr.msk.bf16.mxu1 %vm1090_vm3, %v842_v27 }
 0x138   :  { %847 = vmatpush3.bf16.xpose.msk.msra.mxu1 %vm1090_vm3, %v1084_v31 }
 0x13f   :  { %749 = vmatmul.mubr.msk.f32.vlgmr.msra.gmra.mrb[0].mxu1 %vm426_vm2, %v1041_v33 }
 0x212   :  { %v592_v3 = vpop.f32.mrb[0].mxu1 }
 0x213   :  { %v593_v10 = vadd.f32 %v592_v3, %v424_v36  ;;  %v594_v17 = vpop.f32.mrb[1].mxu1 }
 0x214   :  { %v595_v28 = vadd.f32 %v594_v17, %v424_v36 }
 0x216   :  { %v599_v29 = vcombine.low %v593_v10, %v595_v28 }
 0x218   :  { %601 = vst [vmem:[#allocation2] sm:$0x77] %v599_v29 }
 0x219   :  { %862 = shalt.err (!%p859_p4)
}
 0x21a   :  { %s863_s13 = scalar_lea.hbm %s1166_s5, 128 }
 0x21b   :  { %p864_p5 = scmp.ne.s32.totalorder %s1166_s5, %s863_s13  ;;  %p867_p6 = scmp.lt.u32.totalorder %s863_s13, %s1166_s5 }
 0x21d   :  { %p869_p7 = pnand %p867_p6, %p864_p5 }
 0x21f   :  { %872 = shalt.err (!%p869_p7)
}
 0x220   :  { %611 = dma.vmem_to_hbm [thread:$0]  %s609_s3, 128, %s1166_s5, [#allocation3]  }
 0x221   :  { %873 = dma.done.wait [#allocation3], 128  }
 0x222   :  { %874 = vsyncadd [#allocation3], 4294967168 }
 0x223   :  { %615 = vsyncpa [#allocation3], 1 }

</bundles_post_ra>
